<compile_context>
chip_gen: v5e
topology: v5e:2x2
jax: 0.10.0
libtpu: 0.0.40
codegen_flags: <defaults>
</compile_context>

<pallas_src>
import functools
from typing import Any, NamedTuple

import jax
import jax.numpy as jnp
from jax import lax
from jax.experimental import pallas as pl
from jax.experimental.pallas import tpu as pltpu


def _round_up(n: int, m: int) -> int:
    return ((n + m - 1) // m) * m


class LiquidParams(NamedTuple):
    w_input_t: jax.Array    # (input_size, hidden_size) f32 — host-side projection
    w_hidden_t: jax.Array   # (h_pad, h_pad) compute_dtype — kernel-resident
    bias: jax.Array         # (hidden_size,) f32 — folded into xproj on the host
    input_size: int
    hidden_size: int
    h_pad: int
    compute_dtype: Any


def pack_liquid_params(w_input, w_hidden, bias, compute_dtype=jnp.float32):
    """Transpose / pad parameters ONCE (off the per-step path).

    w_input: (hidden, input), w_hidden: (hidden, hidden), bias: (hidden,).
    On v6e/v7x pass compute_dtype=jnp.bfloat16 for the recurrent MXU operand.
    """
    hidden_size, input_size = w_input.shape
    assert w_hidden.shape == (hidden_size, hidden_size)
    assert bias.shape == (hidden_size,)
    h_pad = _round_up(hidden_size, 128)

    w_hid_t = jnp.zeros((h_pad, h_pad), jnp.float32)
    w_hid_t = w_hid_t.at[:hidden_size, :hidden_size].set(
        jnp.transpose(w_hidden).astype(jnp.float32))

    return LiquidParams(
        jnp.transpose(w_input).astype(jnp.float32),
        w_hid_t.astype(compute_dtype),
        bias.astype(jnp.float32),
        input_size, hidden_size, h_pad, compute_dtype)


def _liquid_seq_kernel(w_hid_ref, s0_ref, xproj_ref, out_ref, state_sc,
                       *, tau: float, t_chunk: int):
    """One grid step = one (batch shard, time chunk).

    Serial per-step work is only: s @ W_hidden^T + xproj[t] -> tanh -> blend.
    """
    chunk = pl.program_id(1)

    @pl.when(chunk == 0)                      # new batch shard -> reload s(0)
    def _():
        state_sc[...] = s0_ref[...].astype(jnp.float32)

    w_hid = w_hid_ref[...]                    # resident weight (loaded once/chunk)

    def step(tt, s):
        # s: (B, H_pad) f32 carry, lives in vregs within the chunk.
        pre = xproj_ref[tt].astype(jnp.float32) + jnp.dot(
            s.astype(w_hid.dtype), w_hid, preferred_element_type=jnp.float32)
        new_s = (1.0 - tau) * s + tau * jnp.tanh(pre)     # f32 VPU + EUP
        out_ref[tt] = new_s.astype(out_ref.dtype)         # lane-dense store
        return new_s

    # Unrolled short inner loop over the time chunk (LLO scheduler visibility).
    state_sc[...] = lax.fori_loop(0, t_chunk, step, state_sc[...], unroll=True)


def _vmem_limit_bytes(*, h_pad, shard_b, t_chunk, w_itemsize, x_itemsize,
                      out_itemsize):
    footprint = (
        2 * h_pad * h_pad * w_itemsize                      # resident W (2 bufs)
        + 2 * shard_b * h_pad * 4                           # s0
        + 2 * t_chunk * shard_b * h_pad * x_itemsize        # xproj chunk (2 bufs)
        + 2 * t_chunk * shard_b * h_pad * out_itemsize      # out chunk (2 bufs)
        + shard_b * h_pad * 4)                              # state scratch
    # Floor at v6e's scoped default, cap below v7x's 64 MiB physical VMEM.
    return int(min(max(footprint * 2, 32 << 20), 56 << 20))


def liquid_neuron_sequence(xs, initial_state, params: LiquidParams, *,
                           tau: float = 0.1, t_chunk: int | None = None,
                           batch_shards: int = 1):
    """Run T timesteps of the recurrence in ONE pallas_call.

    xs: (T, batch, input_size), initial_state: (batch, hidden_size)
    Returns all states: (T, batch, hidden_size) in xs.dtype.
    """
    seq_len, batch, input_size = xs.shape
    assert input_size == params.input_size
    hidden, h_pad = params.hidden_size, params.h_pad
    assert initial_state.shape == (batch, hidden)
    out_dtype = xs.dtype

    if t_chunk is None:
        t_chunk = min(seq_len, 32)
    t_chunk = max(1, min(t_chunk, seq_len))
    n_chunks = pl.cdiv(seq_len, t_chunk)
    t_pad = n_chunks * t_chunk

    shard_b = _round_up(-(-batch // batch_shards), 8)
    b_pad = shard_b * batch_shards

    # ---- Time-parallel input projection, hoisted off the serial path --------
    # One big MXU matmul over all T*B rows; bias folded in here, so padded
    # batch rows / hidden cols / trailing timesteps are exactly zero and the
    # padded state entries stay zero (benign; cropped on return).
    xproj = jnp.einsum('tbi,ih->tbh', xs.astype(jnp.float32),
                       params.w_input_t) + params.bias

    pad_t, pad_b, pad_h = t_pad - seq_len, b_pad - batch, h_pad - hidden
    if pad_t or pad_b or pad_h:
        xproj = jnp.pad(xproj, ((0, pad_t), (0, pad_b), (0, pad_h)))
    s0 = initial_state.astype(jnp.float32)
    if pad_b or pad_h:
        s0 = jnp.pad(s0, ((0, pad_b), (0, pad_h)))

    kernel = functools.partial(_liquid_seq_kernel, tau=float(tau),
                               t_chunk=t_chunk)
    vmem_limit = _vmem_limit_bytes(
        h_pad=h_pad, shard_b=shard_b, t_chunk=t_chunk,
        w_itemsize=jnp.dtype(params.compute_dtype).itemsize,
        x_itemsize=4, out_itemsize=jnp.dtype(out_dtype).itemsize)

    states_p = pl.pallas_call(
        kernel,
        out_shape=jax.ShapeDtypeStruct((t_pad, b_pad, h_pad), out_dtype),
        grid_spec=pltpu.PrefetchScalarGridSpec(
            num_scalar_prefetch=0,
            grid=(batch_shards, n_chunks),       # (parallel shards, serial time)
            in_specs=[
                # W_hidden^T: constant block index -> DMA'd once, VMEM-resident.
                pl.BlockSpec((h_pad, h_pad), lambda s, c: (0, 0)),
                # s(0): per batch shard; only read at chunk 0.
                pl.BlockSpec((shard_b, h_pad), lambda s, c: (s, 0)),
                # xproj: streamed / double-buffered one time-chunk at a time.
                pl.BlockSpec((t_chunk, shard_b, h_pad), lambda s, c: (c, s, 0)),
            ],
            out_specs=pl.BlockSpec((t_chunk, shard_b, h_pad),
                                   lambda s, c: (c, s, 0)),
            scratch_shapes=[
                pltpu.VMEM((shard_b, h_pad), jnp.float32),   # carried state
            ]),
        compiler_params=pltpu.CompilerParams(
            dimension_semantics=("parallel", "arbitrary"),
            vmem_limit_bytes=vmem_limit),
    )(params.w_hidden_t, s0, xproj)

    if pad_t or pad_b or pad_h:
        return states_p[:seq_len, :batch, :hidden]
    return states_p


def liquid_neuron_step(x, previous_state, params: LiquidParams, *,
                       tau: float = 0.1):
    """Single recurrence step with pre-packed params."""
    return liquid_neuron_sequence(x[None], previous_state, params, tau=tau)[0]


def liquid_neuron_forward(x, previous_state, w_input, w_hidden, bias, tau=0.1):
    """Drop-in equivalent of LiquidNeuron.forward (packs params each call;
    prefer pack_liquid_params + liquid_neuron_step/sequence inside a loop)."""
    params = pack_liquid_params(w_input, w_hidden, bias)
    return liquid_neuron_step(x, previous_state, params, tau=tau)


if __name__ == "__main__":
    batch, input_size, hidden_size, tau = 8, 16, 32, 0.1
    seq_len, t_chunk = 13, 8          # 13 % 8 != 0 -> exercises time padding

    key = jax.random.PRNGKey(0)
    k_x, k_s, k_wi, k_wh, k_b, k_x2, k_s2 = jax.random.split(key, 7)

    w_input = jax.random.normal(k_wi, (hidden_size, input_size), jnp.float32)
    w_hidden = jax.random.normal(k_wh, (hidden_size, hidden_size), jnp.float32)
    bias = 0.1 * jax.random.normal(k_b, (hidden_size,), jnp.float32)

    def ref_step(x, s):
        return (1.0 - tau) * s + tau * jnp.tanh(
            x @ w_input.T + s @ w_hidden.T + bias)

    # --- 1. Single step: exact LiquidNeuron.forward semantics ----------------
    x0 = jax.random.normal(k_x, (batch, input_size), jnp.float32)
    s0 = jax.random.normal(k_s, (batch, hidden_size), jnp.float32)
    out1 = jax.block_until_ready(
        liquid_neuron_forward(x0, s0, w_input, w_hidden, bias, tau=tau))
    assert out1.shape == (batch, hidden_size)
    assert jnp.allclose(out1, ref_step(x0, s0), atol=1e-5, rtol=1e-5), \
        "single-step mismatch"

    # --- 2. Chunked multi-step recurrence, 2 batch shards ('parallel' axis) --
    big_batch = 16
    xs = jax.random.normal(k_x2, (seq_len, big_batch, input_size), jnp.float32)
    s0b = jax.random.normal(k_s2, (big_batch, hidden_size), jnp.float32)
    params = pack_liquid_params(w_input, w_hidden, bias)
    states = jax.block_until_ready(
        liquid_neuron_sequence(xs, s0b, params, tau=tau, t_chunk=t_chunk,
                               batch_shards=2))
    assert states.shape == (seq_len, big_batch, hidden_size)
    s = s0b
    for t in range(seq_len):
        s = ref_step(xs[t], s)
        assert jnp.allclose(states[t], s, atol=1e-4, rtol=1e-4), \
            f"sequence mismatch at step {t}"

    print("KERNEL_OK")
</pallas_src>

<mosaic_0001>
module attributes {stable_mosaic.version = 11 : i64} {
  func.func @_liquid_seq_kernel(%arg0: i32, %arg1: i32, %arg2: memref<128x128xf32, #tpu.memory_space<vmem>>, %arg3: memref<8x128xf32, #tpu.memory_space<vmem>>, %arg4: memref<1x8x128xf32, #tpu.memory_space<vmem>>, %arg5: memref<1x8x128xf32, #tpu.memory_space<vmem>>, %arg6: memref<8x128xf32, #tpu.memory_space<vmem>>) attributes {dimension_semantics = [#tpu.dimension_semantics<parallel>, #tpu.dimension_semantics<arbitrary>], iteration_bounds = array<i64: 1, 1>, scalar_prefetch = 0 : i64, scratch_operands = 1 : i64, tpu.core_type = #tpu.core_type<tc>, window_params = [{pipeline_mode = #tpu.pipeline_mode<synchronous>, transform_indices = @transform_0, window_bounds = array<i64: 128, 128>}, {transform_indices = @transform_1, window_bounds = array<i64: 8, 128>}, {transform_indices = @transform_2, window_bounds = array<i64: 1, 8, 128>}, {transform_indices = @transform_3, window_bounds = array<i64: 1, 8, 128>}]} {
    %c0_i32 = arith.constant 0 : i32
    %0 = arith.cmpi eq, %arg1, %c0_i32 : i32
    %1 = arith.extui %0 : i1 to i32
    %c0_i32_0 = arith.constant 0 : i32
    %2 = arith.cmpi ne, %1, %c0_i32_0 : i32
    scf.if %2 {
      %c0_13 = arith.constant 0 : index
      %c0_14 = arith.constant 0 : index
      %21 = vector.load %arg3[%c0_13, %c0_14] : memref<8x128xf32, #tpu.memory_space<vmem>>, vector<8x128xf32>
      %c0_15 = arith.constant 0 : index
      %c0_16 = arith.constant 0 : index
      %22 = vector.load %arg6[%c0_15, %c0_16] : memref<8x128xf32, #tpu.memory_space<vmem>>, vector<8x128xf32>
      tpu.vector_store %arg6[%c0_15, %c0_16], %21 {strides = array<i32>} : memref<8x128xf32, #tpu.memory_space<vmem>>, vector<8x128xf32>,
    } else {
    }
    %c0 = arith.constant 0 : index
    %c0_1 = arith.constant 0 : index
    %3 = vector.load %arg2[%c0, %c0_1] : memref<128x128xf32, #tpu.memory_space<vmem>>, vector<128x128xf32>
    %c0_2 = arith.constant 0 : index
    %c0_3 = arith.constant 0 : index
    %4 = vector.load %arg6[%c0_2, %c0_3] : memref<8x128xf32, #tpu.memory_space<vmem>>, vector<8x128xf32>
    %c0_i32_4 = arith.constant 0 : i32
    %5 = arith.index_cast %c0_i32_4 : i32 to index
    %c0_5 = arith.constant 0 : index
    %c0_6 = arith.constant 0 : index
    %6 = vector.load %arg4[%5, %c0_5, %c0_6] : memref<1x8x128xf32, #tpu.memory_space<vmem>>, vector<1x8x128xf32>
    %7 = vector.shape_cast %6 : vector<1x8x128xf32> to vector<8x128xf32>
    %cst = arith.constant dense<0.000000e+00> : vector<8x128xf32>
    %8 = tpu.matmul %4, %3, %cst {dimension_numbers = #tpu.dot_dimension_numbers<[1], [0], [0], [1], [0, 0, 1, 1], [], []>} : vector<8x128xf32>, vector<128x128xf32>, vector<8x128xf32> -> vector<8x128xf32>
    %9 = arith.addf %7, %8 : vector<8x128xf32>
    %cst_7 = arith.constant 0.899999976 : f32
    %10 = vector.broadcast %cst_7 : f32 to vector<8x128xf32>
    %11 = arith.mulf %10, %4 : vector<8x128xf32>
    %12 = math.tanh %9 : vector<8x128xf32>
    %cst_8 = arith.constant 1.000000e-01 : f32
    %13 = vector.broadcast %cst_8 : f32 to vector<8x128xf32>
    %14 = arith.mulf %13, %12 : vector<8x128xf32>
    %15 = arith.addf %11, %14 : vector<8x128xf32>
    %16 = arith.index_cast %c0_i32_4 : i32 to index
    %c0_9 = arith.constant 0 : index
    %c0_10 = arith.constant 0 : index
    %17 = vector.load %arg5[%16, %c0_9, %c0_10] : memref<1x8x128xf32, #tpu.memory_space<vmem>>, vector<1x8x128xf32>
    %18 = vector.shape_cast %17 : vector<1x8x128xf32> to vector<8x128xf32>
    %19 = vector.shape_cast %15 : vector<8x128xf32> to vector<1x8x128xf32>
    tpu.vector_store %arg5[%16, %c0_9, %c0_10], %19 {strides = array<i32>} : memref<1x8x128xf32, #tpu.memory_space<vmem>>, vector<1x8x128xf32>,
    %c1_i32 = arith.constant 1 : i32
    %c0_11 = arith.constant 0 : index
    %c0_12 = arith.constant 0 : index
    %20 = vector.load %arg6[%c0_11, %c0_12] : memref<8x128xf32, #tpu.memory_space<vmem>>, vector<8x128xf32>
    tpu.vector_store %arg6[%c0_11, %c0_12], %15 {strides = array<i32>} : memref<8x128xf32, #tpu.memory_space<vmem>>, vector<8x128xf32>,
    return
  }
  func.func @transform_0(%arg0: i32, %arg1: i32) -> (i32, i32) {
    %c0_i32 = arith.constant 0 : i32
    %c0_i32_0 = arith.constant 0 : i32
    %c0_i32_1 = arith.constant 0 : i32
    return %c0_i32, %c0_i32_0 : i32, i32
  }
  func.func @transform_1(%arg0: i32, %arg1: i32) -> (i32, i32) {
    %c0_i32 = arith.constant 0 : i32
    %c0_i32_0 = arith.constant 0 : i32
    return %arg0, %c0_i32 : i32, i32
  }
  func.func @transform_2(%arg0: i32, %arg1: i32) -> (i32, i32, i32) {
    %c0_i32 = arith.constant 0 : i32
    %c0_i32_0 = arith.constant 0 : i32
    return %arg1, %arg0, %c0_i32 : i32, i32, i32
  }
  func.func @transform_3(%arg0: i32, %arg1: i32) -> (i32, i32, i32) {
    %c0_i32 = arith.constant 0 : i32
    %c0_i32_0 = arith.constant 0 : i32
    return %arg1, %arg0, %c0_i32 : i32, i32, i32
  }
}

</mosaic_0001>

<bundles_post_ra>
// kernel: tpu_custom_call.1
= control target key start
LH: loop header
LB: loop body
LE: loop exit
PB: predicated region body
PF: predicated region fallthrough
CT: control target
= control target key end

     0   :  { %8 = vsyncpa [#allocation4], 0  ;;  %s275_s0 = inlined_call_operand.hbm [shape: f32[128,128], index: 0, kind: input, shape index: {}]   ;;  %s276_s1 = inlined_call_operand.hbm [shape: f32[8,128], index: 1, kind: input, shape index: {}]   ;;  %s277_s2 = inlined_call_operand.hbm [shape: f32[1,8,128], index: 2, kind: input, shape index: {}]   ;;  %s278_s3 = inlined_call_operand.hbm [shape: f32[1,8,128], index: 3, kind: output, shape index: {}]  }
   0x1   :  { %9 = vsyncpa [#allocation7], 0  ;;  %s29_s14 = sshll.u32 %s276_s1, 4  ;;  %s30_s14 = int_to_ptr.hbm [resolvable:$true] %s29_s14 }
   0x2   :  { %10 = vsyncpa [#allocation5], 0  ;;  %s237_s15 = smov [#allocation6]   ;;  %s15_s19 = sshll.u32 %s275_s0, 4  ;;  %s16_s19 = int_to_ptr.hbm [resolvable:$true] %s15_s19 }
   0x3   :  { %s31_s16 = sshll.u32 %s237_s15, 4  ;;  %s238_s20 = smov [#allocation3]   ;;  %s32_s16 = int_to_ptr.vmem [resolvable:$true] %s31_s16 }
   0x4   :  { %34 = dma.hbm_to_vmem [thread:$0]  %s30_s14, 128, %s32_s16, [#allocation7]  }
   0x5   :  { %s17_s21 = sshll.u32 %s238_s20, 4  ;;  %s239_s22 = smov 128   ;;  %s18_s21 = int_to_ptr.vmem [resolvable:$true] %s17_s21 }
   0x6   :  { %s240_s23 = smov 8   ;;  %s40_s1 = sshll.u32 %s277_s2, 4  ;;  %s41_s1 = int_to_ptr.hbm [resolvable:$true] %s40_s1 }
   0x7   :  { %23 = dma.hbm_to_vmem [thread:$0]  %s16_s19, 2048, %s18_s21, [#allocation4], %s239_s22, %s239_s22, %s240_s23  }
   0x8   :  { %s241_s26 = smov [#allocation8]  }
   0x9   :  { %s42_s27 = sshll.u32 %s241_s26, 4  ;;  %s43_s27 = int_to_ptr.vmem [resolvable:$true] %s42_s27 }
   0xa   :  { %45 = dma.hbm_to_vmem [thread:$0]  %s41_s1, 128, %s43_s27, [#allocation7]  }
   0xb   :  { %231 = dma.done.wait [#allocation4], 2048  }
   0xc   :  { %232 = vsyncadd [#allocation4], 4294965248 }
   0xd   :  { %233 = dma.done.wait [#allocation7], 256  }
   0xe   :  { %234 = vsyncadd [#allocation7], 4294967040  ;;  %v79_v0 = vld [vmem:[#allocation3 + $0x78] sm:$0xff]  ;;  %v78_v1 = vld [vmem:[#allocation3 + $0x70] sm:$0xff]  ;;  %s242_s0 = smov [#allocation9]   ;;  %s116_s30 = sshll.u32 %s278_s3, 4  ;;  %s117_s30 = int_to_ptr.hbm [resolvable:$true] %s116_s30 }
   0xf   :  { %82 = vmatpush.msra.mxu0 %v79_v0  ;;  %v77_v2 = vld [vmem:[#allocation3 + $0x68] sm:$0xff]  ;;  %v76_v3 = vld [vmem:[#allocation3 + $0x60] sm:$0xff]  ;;  %v75_v4 = vld [vmem:[#allocation3 + $0x58] sm:$0xff]  ;;  %s114_s2 = sshll.u32 %s242_s0, 4  ;;  %s115_s2 = int_to_ptr.vmem [resolvable:$true] %s114_s2 }
  0x10   :  { %v74_v5 = vld [vmem:[#allocation3 + $0x50] sm:$0xff]  ;;  %v73_v6 = vld [vmem:[#allocation3 + $0x48] sm:$0xff]  ;;  %v72_v7 = vld [vmem:[#allocation3 + $0x40] sm:$0xff] }
  0x11   :  { %83 = vmatpush.msra.mxu0 %v78_v1  ;;  %v71_v8 = vld [vmem:[#allocation3 + $0x38] sm:$0xff]  ;;  %v70_v9 = vld [vmem:[#allocation3 + $0x30] sm:$0xff]  ;;  %v69_v10 = vld [vmem:[#allocation3 + $0x28] sm:$0xff] }
  0x12   :  { %v68_v11 = vld [vmem:[#allocation3 + $0x20] sm:$0xff]  ;;  %v67_v12 = vld [vmem:[#allocation3 + $0x18] sm:$0xff]  ;;  %v66_v13 = vld [vmem:[#allocation3 + $0x10] sm:$0xff] }
  0x13   :  { %84 = vmatpush.msra.mxu0 %v77_v2  ;;  %v65_v14 = vld [vmem:[#allocation3 + $0x8] sm:$0xff]  ;;  %v64_v15 = vld [vmem:[#allocation3] sm:$0xff] }
  0x14   :  { %v62_v16 = vld [vmem:[#allocation6] sm:$0xff]  ;;  %v81_v17 = vld [vmem:[#allocation8] sm:$0xff] }
  0x15   :  { %85 = vmatpush.msra.mxu0 %v76_v3  ;;  %v103_v20 = vmul.f32 0.9, %v62_v16 }
  0x17   :  { %86 = vmatpush.msra.mxu0 %v75_v4 }
  0x19   :  { %87 = vmatpush.msra.mxu0 %v74_v5 }
  0x1b   :  { %88 = vmatpush.msra.mxu0 %v73_v6 }
  0x1d   :  { %89 = vmatpush.msra.mxu0 %v72_v7 }
  0x1f   :  { %90 = vmatpush.msra.mxu0 %v71_v8 }
  0x21   :  { %91 = vmatpush.msra.mxu0 %v70_v9 }
  0x23   :  { %92 = vmatpush.msra.mxu0 %v69_v10 }
  0x25   :  { %93 = vmatpush.msra.mxu0 %v68_v11 }
  0x27   :  { %94 = vmatpush.msra.mxu0 %v67_v12 }
  0x29   :  { %95 = vmatpush.msra.mxu0 %v66_v13 }
  0x2b   :  { %96 = vmatpush.msra.mxu0 %v65_v14 }
  0x2d   :  { %97 = vmatpush.msra.mxu0 %v64_v15 }
  0x2e   :  { %98 = vmatmul.f32.vlgmr.msra.gmra.mxu0 %v62_v16 }
  0xab   :  { %v99_v18 = vpop.f32.mrf.mxu0 }
  0xac   :  { %v102_v19 = vadd.f32 %v99_v18, %v81_v17 }
  0xae   :  { %133 = vtanh.f32 %v102_v19 }
  0xb4   :  { %v134_v21 = vpop.eup %133 }
  0xb5   :  { %v105_v22 = vmul.f32 0.1, %v134_v21 }
  0xb7   :  { %v106_v23 = vadd.f32 %v105_v22, %v103_v20 }
  0xb9   :  { %107 = vst [vmem:[#allocation9] sm:$0xff] %v106_v23 }
  0xba   :  { %119 = dma.vmem_to_hbm [thread:$0]  %s115_s2, 128, %s117_s30, [#allocation5]  }
  0xbb   :  { %235 = dma.done.wait [#allocation5], 128  }
  0xbc   :  { %236 = vsyncadd [#allocation5], 4294967168 }
  0xbd   :  { %124 = vsyncpa [#allocation4], 1 }
  0xbe   :  { %125 = vsyncpa [#allocation7], 1 }
  0xbf   :  { %126 = vsyncpa [#allocation5], 1 }

</bundles_post_ra>
